<compile_context>
chip_gen: v5e
topology: v5e:2x2
jax: 0.10.0
libtpu: 0.0.40
codegen_flags: <defaults>
</compile_context>

<pallas_src>
import jax
import jax.numpy as jnp
from jax.experimental import pallas as pl
from jax.experimental.pallas import tpu as pltpu


def _round_up(x, m):
    return ((x + m - 1) // m) * m


def _linear_kernel(x_ref, w_ref, b_ref, o_ref):
    # o = x @ w + b   (w pre-transposed to (K, N) in the wrapper).
    # MXU matmul with f32 accumulation regardless of the input dtype.
    acc = jnp.dot(x_ref[...], w_ref[...], preferred_element_type=jnp.float32)
    o_ref[...] = (acc + b_ref[...]).astype(o_ref.dtype)


def _choose_row_tile(M, requested, pack):
    """Pick the row-tile for the streaming linear.

    * Tiny inputs get a single block covering the whole array (block dims equal
      the array dims, so no (8,128)/packing constraints apply).
    * Otherwise the tile is capped so the "parallel" row axis has >= 2 blocks
      (keeps both v7x TensorCores fed) and rounded to 256-row / packed-sublane
      granularity so boundary blocks are rare and loads stay unmasked.
    """
    if M <= 2 * pack:
        return M
    cap = _round_up(pl.cdiv(M, 2), 256)
    tile = max(pack, min(requested, cap, _round_up(M, pack)))
    return _round_up(tile, pack)


def pallas_linear(x, w_t, b2d, *, row_tile=4096, out_dtype=None):
    """y = x @ w_t + b with x:(M,K), w_t:(K,N) (same dtype as x), b2d:(1,N) f32.

    Rows stream through VMEM in large blocks (grid = cdiv(M, tile)); the
    partial final block is handled by Pallas' masked boundary handling, so M
    need not divide evenly and the whole activation is never resident at once.
    Default pipelining depth (double-buffering) is kept: the stage is
    bandwidth-bound, so extra VMEM goes to a bigger tile, not deeper buffers.
    """
    M, K = x.shape
    K2, N = w_t.shape
    assert K == K2
    assert w_t.dtype == x.dtype, "pre-cast weights once via prepare_fd_base_params"
    if out_dtype is None:
        out_dtype = x.dtype

    # Packed-sublane granularity: 8 rows (f32), 16 (bf16), 32 (int8/fp8).
    pack = 8 * (4 // max(1, x.dtype.itemsize))
    tile = _choose_row_tile(M, row_tile, pack)
    grid = (pl.cdiv(M, tile),)

    out_itemsize = jnp.dtype(out_dtype).itemsize
    cost = pl.CostEstimate(
        flops=2 * M * K * N,
        transcendentals=0,
        bytes_accessed=(M * K * x.dtype.itemsize
                        + K * N * w_t.dtype.itemsize
                        + N * 4
                        + M * N * out_itemsize),
    )

    return pl.pallas_call(
        _linear_kernel,
        out_shape=jax.ShapeDtypeStruct((M, N), out_dtype),
        grid=grid,
        in_specs=[
            pl.BlockSpec((tile, K), lambda i: (i, 0)),
            pl.BlockSpec((K, N), lambda i: (0, 0)),
            pl.BlockSpec((1, N), lambda i: (0, 0)),
        ],
        out_specs=pl.BlockSpec((tile, N), lambda i: (i, 0)),
        compiler_params=pltpu.CompilerParams(
            dimension_semantics=("parallel",)),
        cost_estimate=cost,
    )(x, w_t, b2d)


def init_fd_base_params(key, max_length, hidden=768):
    """Deterministic synthetic f32 weights matching FD_BASE.__init__ shapes."""
    k1, k2, k3, k4 = jax.random.split(key, 4)
    # nn.Linear(max_length, 5): weight (5, max_length), bias (5,)
    w1 = jax.random.normal(k1, (5, max_length), jnp.float32) * 0.02
    b1 = jax.random.normal(k2, (5,), jnp.float32) * 0.02
    # nn.Linear(768, 2): weight (2, 768), bias (2,)
    w2 = jax.random.normal(k3, (2, hidden), jnp.float32) * 0.02
    b2 = jax.random.normal(k4, (2,), jnp.float32) * 0.02
    return {"w1": w1, "b1": b1, "w2": w2, "b2": b2}


def prepare_fd_base_params(params, act_dtype):
    """One-time operand preparation (transpose / cast / reshape), hoisted out
    of the per-call wrapper so the forward pass emits no stray XLA ops.

    linear2's weights are explicitly quantized to the activation dtype (bf16
    in the demo); the MXU still accumulates in f32.
    """
    return {
        "w2_t": params["w2"].T.astype(act_dtype),              # (768, 2)
        "b2": params["b2"].reshape(1, -1).astype(jnp.float32),  # (1, 2), f32 add
        "w1_t": params["w1"].T.astype(jnp.float32),             # (L, 5), jnp tail
        "b1": params["b1"].astype(jnp.float32),                  # (5,)
    }


def fd_base_forward(hidden, prepped, max_length, *, row_tile=4096):
    """hidden: (B, max_length, 768) -- stand-in for model(**input).last_hidden_state."""
    # TODO(synk): the pretrained BERT/Longformer backbone itself is not translated.
    B, L, H = hidden.shape
    assert L == max_length and H == 768

    # linear2: (B*L, 768) @ (768, 2) + (2,)  -- HBM-read-bound streaming stage.
    # Output kept in the activation dtype (lane-sparse N=2 => cheaper buffers,
    # stores and writeback).
    y = pallas_linear(hidden.reshape(B * L, H), prepped["w2_t"], prepped["b2"],
                      row_tile=row_tile)

    # output.view(-1, 2, max_length): row-major reinterpretation of the tiny
    # (B*L, 2) intermediate -- plain-JAX glue matching torch.view exactly.
    z = y.reshape(B, 2, L).astype(jnp.float32)

    # linear1: (B, 2, L) @ (L, 5) + (5,) is a few kFLOPs; done with plain jnp
    # so XLA fuses it with the reshape glue instead of paying another
    # pallas_call launch plus an HBM round trip of the tiny intermediate.
    out = jnp.einsum("bcl,lf->bcf", z, prepped["w1_t"]) + prepped["b1"]

    # output.view(-1, 5, 2)
    return out.reshape(B, 5, 2)


def fd_base_reference(hidden, params, max_length,
                      weight_dtype=jnp.float32, y_dtype=jnp.float32):
    """Plain-JAX mirror of the torch code. `weight_dtype` / `y_dtype` let the
    check exactly mirror the kernel's bf16 weight / intermediate quantization."""
    h = hidden.astype(jnp.float32)
    w2 = params["w2"].astype(weight_dtype).astype(jnp.float32)
    y = (h @ w2.T + params["b2"]).astype(y_dtype).astype(jnp.float32)  # (B, L, 2)
    z = y.reshape(-1, 2, max_length)                                    # .view(-1, 2, L)
    out = z @ params["w1"].T + params["b1"]                             # (B, 2, 5)
    return out.reshape(-1, 5, 2)                                        # .view(-1, 5, 2)


def _run_case(key, B, L, row_tile, act_dtype):
    k_params, k_hidden = jax.random.split(key)
    params = init_fd_base_params(k_params, L, 768)
    prepped = prepare_fd_base_params(params, act_dtype)
    hidden = jax.random.normal(k_hidden, (B, L, 768), jnp.float32).astype(act_dtype)

    out = jax.block_until_ready(
        fd_base_forward(hidden, prepped, L, row_tile=row_tile))
    assert out.shape == (B, 5, 2), out.shape

    # Exact mirror of the kernel's numerics (same weight/intermediate dtypes).
    ref_mirror = fd_base_reference(hidden, params, L,
                                   weight_dtype=act_dtype, y_dtype=act_dtype)
    assert jnp.allclose(out, ref_mirror, atol=2e-3, rtol=0), (
        f"mismatch vs mirror reference (B={B}, L={L})")

    # Looser semantic check against the pure-f32 torch computation (the only
    # deviation is the explicit bf16 weight/intermediate quantization).
    ref_f32 = fd_base_reference(hidden, params, L)
    assert jnp.allclose(out, ref_f32, atol=3e-2, rtol=1e-2), (
        f"mismatch vs f32 reference (B={B}, L={L})")


if __name__ == "__main__":
    key = jax.random.PRNGKey(0)
    k0, k1 = jax.random.split(key)

    # Small demo shape (B=2, seq=8, hidden=768): single full-array block path.
    _run_case(k0, B=2, L=8, row_tile=4096, act_dtype=jnp.bfloat16)

    # Tiled path: M = 2*200 = 400 rows -> two 256-row "parallel" blocks with a
    # masked partial second block.
    _run_case(k1, B=2, L=200, row_tile=4096, act_dtype=jnp.bfloat16)

    print("KERNEL_OK")
</pallas_src>

<mosaic_0001>
module attributes {stable_mosaic.version = 11 : i64} {
  func.func @_linear_kernel(%arg0: i32, %arg1: memref<16x768xbf16, #tpu.memory_space<vmem>>, %arg2: memref<768x2xbf16, #tpu.memory_space<vmem>>, %arg3: memref<1x2xf32, #tpu.memory_space<vmem>>, %arg4: memref<16x2xbf16, #tpu.memory_space<vmem>>) attributes {dimension_semantics = [#tpu.dimension_semantics<parallel>], iteration_bounds = array<i64: 1>, scalar_prefetch = 0 : i64, scratch_operands = 0 : i64, tpu.core_type = #tpu.core_type<tc>, window_params = [{transform_indices = @transform_0, window_bounds = array<i64: 16, 768>}, {pipeline_mode = #tpu.pipeline_mode<synchronous>, transform_indices = @transform_1, window_bounds = array<i64: 768, 2>}, {pipeline_mode = #tpu.pipeline_mode<synchronous>, transform_indices = @transform_2, window_bounds = array<i64: 1, 2>}, {transform_indices = @transform_3, window_bounds = array<i64: 16, 2>}]} {
    %c0 = arith.constant 0 : index
    %c0_0 = arith.constant 0 : index
    %0 = vector.load %arg1[%c0, %c0_0] : memref<16x768xbf16, #tpu.memory_space<vmem>>, vector<16x768xbf16>
    %c0_1 = arith.constant 0 : index
    %c0_2 = arith.constant 0 : index
    %1 = vector.load %arg2[%c0_1, %c0_2] : memref<768x2xbf16, #tpu.memory_space<vmem>>, vector<768x2xbf16>
    %cst = arith.constant dense<0.000000e+00> : vector<16x2xf32>
    %2 = tpu.matmul %0, %1, %cst {dimension_numbers = #tpu.dot_dimension_numbers<[1], [0], [0], [1], [0, 0, 1, 1], [], []>} : vector<16x768xbf16>, vector<768x2xbf16>, vector<16x2xf32> -> vector<16x2xf32>
    %c0_3 = arith.constant 0 : index
    %c0_4 = arith.constant 0 : index
    %3 = vector.load %arg3[%c0_3, %c0_4] : memref<1x2xf32, #tpu.memory_space<vmem>>, vector<1x2xf32>
    %4 = vector.broadcast %3 : vector<1x2xf32> to vector<16x2xf32>
    %5 = arith.addf %2, %4 : vector<16x2xf32>
    %6 = arith.truncf %5 : vector<16x2xf32> to vector<16x2xbf16>
    %c0_5 = arith.constant 0 : index
    %c0_6 = arith.constant 0 : index
    %7 = vector.load %arg4[%c0_5, %c0_6] : memref<16x2xbf16, #tpu.memory_space<vmem>>, vector<16x2xbf16>
    tpu.vector_store %arg4[%c0_5, %c0_6], %6 {strides = array<i32>} : memref<16x2xbf16, #tpu.memory_space<vmem>>, vector<16x2xbf16>,
    return
  }
  func.func @transform_0(%arg0: i32) -> (i32, i32) {
    %c0_i32 = arith.constant 0 : i32
    %c0_i32_0 = arith.constant 0 : i32
    return %arg0, %c0_i32 : i32, i32
  }
  func.func @transform_1(%arg0: i32) -> (i32, i32) {
    %c0_i32 = arith.constant 0 : i32
    %c0_i32_0 = arith.constant 0 : i32
    %c0_i32_1 = arith.constant 0 : i32
    return %c0_i32, %c0_i32_0 : i32, i32
  }
  func.func @transform_2(%arg0: i32) -> (i32, i32) {
    %c0_i32 = arith.constant 0 : i32
    %c0_i32_0 = arith.constant 0 : i32
    %c0_i32_1 = arith.constant 0 : i32
    return %c0_i32, %c0_i32_0 : i32, i32
  }
  func.func @transform_3(%arg0: i32) -> (i32, i32) {
    %c0_i32 = arith.constant 0 : i32
    %c0_i32_0 = arith.constant 0 : i32
    return %arg0, %c0_i32 : i32, i32
  }
}

</mosaic_0001>

<bundles_post_ra>
// kernel: tpu_custom_call.1
= control target key start
LH: loop header
LB: loop body
LE: loop exit
PB: predicated region body
PF: predicated region fallthrough
CT: control target
= control target key end

     0   :  { %vm524_vm0 = vcmask 11264   ;;  %s1011_s1 = inlined_call_operand.vmem [shape: bf16[768,2], index: 1, kind: input, shape index: {}]   ;;  %s1012_s2 = inlined_call_operand.vmem [shape: f32[1,2], index: 2, kind: input, shape index: {}]   ;;  %s1013_s0 = inlined_call_operand.vmem [shape: bf16[16,768], index: 0, kind: input, shape index: {}]   ;;  %s1014_s3 = inlined_call_operand.vmem [shape: bf16[16,2], index: 3, kind: output, shape index: {}]  }
   0x1   :  { %v760_v0 = vld [vmem:[%s1011_s1 + $0x38] sm:$0xff]  ;;  %v759_v4 = vld [vmem:[%s1011_s1 + $0x30] sm:$0xff]  ;;  %v758_v8 = vld [vmem:[%s1011_s1 + $0x28] sm:$0xff] }
   0x2   :  { %v768_v1 = vld [vmem:[%s1011_s1 + $0x78] sm:$0xff]  ;;  %438 = vmatpush.bf16.msra.mxu0 %v760_v0  ;;  %v767_v5 = vld [vmem:[%s1011_s1 + $0x70] sm:$0xff]  ;;  %v766_v9 = vld [vmem:[%s1011_s1 + $0x68] sm:$0xff] }
   0x3   :  { %v776_v2 = vld [vmem:[%s1011_s1 + $0xb8] sm:$0xff]  ;;  %452 = vmatpush.bf16.msra.mxu1 %v768_v1  ;;  %v775_v6 = vld [vmem:[%s1011_s1 + $0xb0] sm:$0xff]  ;;  %v774_v10 = vld [vmem:[%s1011_s1 + $0xa8] sm:$0xff] }
   0x4   :  { %v784_v3 = vld [vmem:[%s1011_s1 + $0xf8] sm:$0xff]  ;;  %466 = vmatpush.bf16.msra.mxu2 %v776_v2  ;;  %v783_v7 = vld [vmem:[%s1011_s1 + $0xf0] sm:$0xff]  ;;  %v782_v11 = vld [vmem:[%s1011_s1 + $0xe8] sm:$0xff] }
   0x5   :  { %480 = vmatpush.bf16.msra.mxu3 %v784_v3  ;;  %v757_v12 = vld [vmem:[%s1011_s1 + $0x20] sm:$0xff]  ;;  %v756_v16 = vld [vmem:[%s1011_s1 + $0x18] sm:$0xff]  ;;  %v755_v20 = vld [vmem:[%s1011_s1 + $0x10] sm:$0xff] }
   0x6   :  { %439 = vmatpush.bf16.msra.mxu0 %v759_v4  ;;  %v765_v13 = vld [vmem:[%s1011_s1 + $0x60] sm:$0xff]  ;;  %v764_v17 = vld [vmem:[%s1011_s1 + $0x58] sm:$0xff]  ;;  %v763_v21 = vld [vmem:[%s1011_s1 + $0x50] sm:$0xff] }
   0x7   :  { %453 = vmatpush.bf16.msra.mxu1 %v767_v5  ;;  %v773_v14 = vld [vmem:[%s1011_s1 + $0xa0] sm:$0xff]  ;;  %v772_v18 = vld [vmem:[%s1011_s1 + $0x98] sm:$0xff]  ;;  %v771_v22 = vld [vmem:[%s1011_s1 + $0x90] sm:$0xff] }
   0x8   :  { %467 = vmatpush.bf16.msra.mxu2 %v775_v6  ;;  %v781_v15 = vld [vmem:[%s1011_s1 + $0xe0] sm:$0xff]  ;;  %v780_v19 = vld [vmem:[%s1011_s1 + $0xd8] sm:$0xff]  ;;  %v779_v23 = vld [vmem:[%s1011_s1 + $0xd0] sm:$0xff] }
   0x9   :  { %481 = vmatpush.bf16.msra.mxu3 %v783_v7  ;;  %v754_v24 = vld [vmem:[%s1011_s1 + $0x8] sm:$0xff]  ;;  %v753_v28 = vld [vmem:[%s1011_s1] sm:$0xff]  ;;  %v750_v31 = vld [vmem:[%s1013_s0 + $0x14] sm:$0xf0] }
   0xa   :  { %440 = vmatpush.bf16.msra.mxu0 %v758_v8  ;;  %v762_v25 = vld [vmem:[%s1011_s1 + $0x48] sm:$0xff]  ;;  %v761_v29 = vld [vmem:[%s1011_s1 + $0x40] sm:$0xff]  ;;  %v535_v33 = vld [vmem:[%s1013_s0 + $0x18] sm:$0xf0] }
   0xb   :  { %454 = vmatpush.bf16.msra.mxu1 %v766_v9  ;;  %v770_v26 = vld [vmem:[%s1011_s1 + $0x88] sm:$0xff]  ;;  %v533_v30 = vld [vmem:[%s1013_s0] sm:$0xf]  ;;  %v747_v32 = vld [vmem:[%s1013_s0 + $0x4] sm:$0xf] }
   0xc   :  { %468 = vmatpush.bf16.msra.mxu2 %v774_v10  ;;  %v778_v27 = vld [vmem:[%s1011_s1 + $0xc8] sm:$0xff]  ;;  %v792_v34 = vld [vmem:[%s1011_s1 + $0x138] sm:$0xff]  ;;  %v769_v36 = vld [vmem:[%s1011_s1 + $0x80] sm:$0xff]  ;;  %v534_v40 = vor.u32 %v750_v31, %v533_v30  ;;  %v538_v43 = vor.u32 %v747_v32, %v535_v33 }
   0xd   :  { %482 = vmatpush.bf16.msra.mxu3 %v782_v11  ;;  %v800_v35 = vld [vmem:[%s1011_s1 + $0x178] sm:$0xff]  ;;  %v777_v37 = vld [vmem:[%s1011_s1 + $0xc0] sm:$0xff]  ;;  %v541_v38 = vld [vmem:[%s1013_s0 + $0x8] sm:$0xf] }
   0xe   :  { %441 = vmatpush.bf16.msra.mxu0 %v757_v12  ;;  %v751_v39 = vld [vmem:[%s1013_s0 + $0x1c] sm:$0xf0]  ;;  %v748_v41 = vld [vmem:[%s1013_s0 + $0xc] sm:$0xf]  ;;  %v543_v42 = vld [vmem:[%s1013_s0 + $0x20] sm:$0xf0] }
   0xf   :  { %455 = vmatpush.bf16.msra.mxu1 %v765_v13  ;;  %v791_v44 = vld [vmem:[%s1011_s1 + $0x130] sm:$0xff]  ;;  %v542_v46 = vor.u32 %v751_v39, %v541_v38  ;;  %v546_v47 = vor.u32 %v748_v41, %v543_v42  ;;  %v790_v48 = vld [vmem:[%s1011_s1 + $0x128] sm:$0xff]  ;;  %v789_v50 = vld [vmem:[%s1011_s1 + $0x120] sm:$0xff] }
  0x10   :  { %469 = vmatpush.bf16.msra.mxu2 %v773_v14  ;;  %v799_v45 = vld [vmem:[%s1011_s1 + $0x170] sm:$0xff]  ;;  %v798_v49 = vld [vmem:[%s1011_s1 + $0x168] sm:$0xff]  ;;  %v797_v51 = vld [vmem:[%s1011_s1 + $0x160] sm:$0xff] }
  0x11   :  { %483 = vmatpush.bf16.msra.mxu3 %v781_v15  ;;  %v788_v52 = vld [vmem:[%s1011_s1 + $0x118] sm:$0xff]  ;;  %v787_v54 = vld [vmem:[%s1011_s1 + $0x110] sm:$0xff]  ;;  %v786_v56 = vld [vmem:[%s1011_s1 + $0x108] sm:$0xff] }
  0x12   :  { %442 = vmatpush.bf16.msra.mxu0 %v756_v16  ;;  %v796_v53 = vld [vmem:[%s1011_s1 + $0x158] sm:$0xff]  ;;  %v795_v55 = vld [vmem:[%s1011_s1 + $0x150] sm:$0xff]  ;;  %v794_v57 = vld [vmem:[%s1011_s1 + $0x148] sm:$0xff] }
  0x13   :  { %456 = vmatpush.bf16.msra.mxu1 %v764_v17  ;;  %v785_v58 = vld [vmem:[%s1011_s1 + $0x100] sm:$0xff]  ;;  %v549_v60 = vld [vmem:[%s1013_s0 + $0x10] sm:$0xf]  ;;  %v752_v61 = vld [vmem:[%s1013_s0 + $0x24] sm:$0xf0] }
  0x14   :  { %470 = vmatpush.bf16.msra.mxu2 %v772_v18  ;;  %v793_v59 = vld [vmem:[%s1011_s1 + $0x140] sm:$0xff]  ;;  %v749_v62 = vld [vmem:[%s1013_s0 + $0x14] sm:$0xf]  ;;  %v551_v63 = vld [vmem:[%s1013_s0 + $0x28] sm:$0xf0]  ;;  %v550_v0 = vor.u32 %v752_v61, %v549_v60 }
  0x15   :  { %484 = vmatpush.bf16.msra.mxu3 %v780_v19  ;;  %v554_v1 = vor.u32 %v749_v62, %v551_v63  ;;  %v801_v4 = vld [vmem:[%s1012_s2] ss:$0 sm:$0xff] }
  0x16   :  { %443 = vmatpush.bf16.msra.mxu0 %v755_v20 }
  0x17   :  { %457 = vmatpush.bf16.msra.mxu1 %v763_v21 }
  0x18   :  { %471 = vmatpush.bf16.msra.mxu2 %v771_v22 }
  0x19   :  { %485 = vmatpush.bf16.msra.mxu3 %v779_v23 }
  0x1a   :  { %444 = vmatpush.bf16.msra.mxu0 %v754_v24 }
  0x1b   :  { %458 = vmatpush.bf16.msra.mxu1 %v762_v25 }
  0x1c   :  { %472 = vmatpush.bf16.msra.mxu2 %v770_v26 }
  0x1d   :  { %486 = vmatpush.bf16.msra.mxu3 %v778_v27 }
  0x1e   :  { %445 = vmatpush.bf16.msra.mxu0 %v753_v28 }
  0x1f   :  { %459 = vmatpush.bf16.msra.mxu1 %v761_v29 }
  0x20   :  { %473 = vmatpush.bf16.msra.mxu2 %v769_v36 }
  0x21   :  { %487 = vmatpush.bf16.msra.mxu3 %v777_v37  ;;  %446 = vmatmul.bf16.vlgmr.msra.gmra.mxu0 %v534_v40 }
  0x22   :  { %494 = vmatpush.bf16.msrb.mxu0 %v792_v34  ;;  %460 = vmatmul.bf16.vlgmr.msra.gmra.mxu1 %v538_v43 }
  0x23   :  { %508 = vmatpush.bf16.msrb.mxu1 %v800_v35  ;;  %474 = vmatmul.bf16.vlgmr.msra.gmra.mxu2 %v542_v46 }
  0x24   :  { %488 = vmatmul.bf16.vlgmr.msra.gmra.mxu3 %v546_v47 }
  0x26   :  { %495 = vmatpush.bf16.msrb.mxu0 %v791_v44 }
  0x27   :  { %509 = vmatpush.bf16.msrb.mxu1 %v799_v45 }
  0x2a   :  { %496 = vmatpush.bf16.msrb.mxu0 %v790_v48 }
  0x2b   :  { %510 = vmatpush.bf16.msrb.mxu1 %v798_v49 }
  0x2e   :  { %497 = vmatpush.bf16.msrb.mxu0 %v789_v50 }
  0x2f   :  { %511 = vmatpush.bf16.msrb.mxu1 %v797_v51 }
  0x32   :  { %498 = vmatpush.bf16.msrb.mxu0 %v788_v52 }
  0x33   :  { %512 = vmatpush.bf16.msrb.mxu1 %v796_v53 }
  0x36   :  { %499 = vmatpush.bf16.msrb.mxu0 %v787_v54 }
  0x37   :  { %513 = vmatpush.bf16.msrb.mxu1 %v795_v55 }
  0x3a   :  { %500 = vmatpush.bf16.msrb.mxu0 %v786_v56 }
  0x3b   :  { %514 = vmatpush.bf16.msrb.mxu1 %v794_v57 }
  0x3e   :  { %501 = vmatpush.bf16.msrb.mxu0 %v785_v58 }
  0x3f   :  { %515 = vmatpush.bf16.msrb.mxu1 %v793_v59 }
  0x41   :  { %502 = vmatmul.bf16.vlgmr.msrb.gmra.mxu0 %v550_v0 }
  0x42   :  { %516 = vmatmul.bf16.vlgmr.msrb.gmra.mxu1 %v554_v1 }
  0x9e   :  { %v447_v2 = vpop.f32.mrf.mxu0 }
  0x9f   :  { %v461_v3 = vpop.f32.mrf.mxu1  ;;  %v448_v5 = vadd.f32 %v801_v4, %v447_v2 }
  0xa1   :  { %v462_v7 = vadd.f32 %v461_v3, %v448_v5 }
  0xa6   :  { %v475_v6 = vpop.f32.mrf.mxu2  ;;  %v449_v8 = vpop.f32.mrf.mxu0 }
  0xa7   :  { %v463_v9 = vpop.f32.mrf.mxu1  ;;  %v489_v10 = vpop.f32.mrf.mxu3  ;;  %v476_v11 = vadd.f32 %v475_v6, %v462_v7  ;;  %v450_v12 = vadd.f32 %v801_v4, %v449_v8 }
  0xa9   :  { %v490_v13 = vadd.f32 %v489_v10, %v476_v11  ;;  %v464_v14 = vadd.f32 %v463_v9, %v450_v12 }
  0xae   :  { %v477_v15 = vpop.f32.mrf.mxu2 }
  0xaf   :  { %v478_v19 = vadd.f32 %v477_v15, %v464_v14  ;;  %v491_v21 = vpop.f32.mrf.mxu3 }
  0xb1   :  { %v492_v23 = vadd.f32 %v491_v21, %v478_v19 }
  0xbe   :  { %v503_v16 = vpop.f32.mrf.mxu0 }
  0xbf   :  { %v517_v17 = vpop.f32.mrf.mxu1  ;;  %v504_v18 = vadd.f32 %v503_v16, %v490_v13 }
  0xc1   :  { %v518_v20 = vadd.f32 %v517_v17, %v504_v18 }
  0xc3   :  { %v522_v22 = vpack.c.bf16 %v518_v20, %v518_v20 }
  0xc5   :  { %525 = vst.msk [vmem:[%s1014_s3] sm:$0xf] %vm524_vm0, %v522_v22 }
  0xc6   :  { %v505_v24 = vpop.f32.mrf.mxu0 }
  0xc7   :  { %v506_v25 = vadd.f32 %v505_v24, %v492_v23  ;;  %v519_v26 = vpop.f32.mrf.mxu1 }
  0xc9   :  { %v520_v27 = vadd.f32 %v519_v26, %v506_v25 }
  0xcb   :  { %v523_v28 = vpack.c.bf16 %v520_v27, %v520_v27 }
  0xcd   :  { %526 = vst.msk [vmem:[%s1014_s3 + $0x4] sm:$0xf] %vm524_vm0, %v523_v28 }

</bundles_post_ra>
